<compile_context>
chip_gen: v7x
topology: tpu7x:2x2x1
jax: 0.10.0
libtpu: 0.0.40
codegen_flags: <defaults>
</compile_context>

<pallas_src>
import functools

import jax
import jax.numpy as jnp
from jax.experimental import pallas as pl
from jax.experimental.pallas import tpu as pltpu

NUM_CLASSES = 25
LANE = 128
SUBLANE = 8


def _round_up(x, m):
    return (x + m - 1) // m * m


# ---------------------------------------------------------------------------
# Shared in-kernel math: pooled features -> tanh -> linear -> log-softmax
# ---------------------------------------------------------------------------
def _compute_logprobs(feat, we, be, wc, bc, num_classes):
    # feat:(TB,Kp)  we:(Kp,Dp)  be:(1,Dp)  wc:(Dp,Np)  bc:(1,Np)
    pooled = jnp.dot(feat, we, preferred_element_type=jnp.float32) + be
    h = jnp.tanh(pooled)                       # padded D cols stay exactly 0 -> tanh(0)=0
    logits = jnp.dot(h, wc, preferred_element_type=jnp.float32) + bc
    tb, np_ = logits.shape
    lane = jax.lax.broadcasted_iota(jnp.int32, (tb, np_), 1)
    logits = jnp.where(lane < num_classes, logits, -jnp.inf)   # mask padded classes
    m = jnp.max(logits, axis=-1, keepdims=True)
    z = logits - m
    lse = jnp.log(jnp.sum(jnp.exp(z), axis=-1, keepdims=True))
    return z - lse, lane


# ---------------------------------------------------------------------------
# Fused kernel — inference variant (no label, no loss work)
# ---------------------------------------------------------------------------
def _fused_infer_kernel(feat_ref, we_ref, be_ref, wc_ref, bc_ref,
                        logprobs_ref, *, num_classes):
    lp, _ = _compute_logprobs(feat_ref[...], we_ref[...], be_ref[...],
                              wc_ref[...], bc_ref[...], num_classes)
    logprobs_ref[...] = lp


# ---------------------------------------------------------------------------
# Fused kernel — training variant (log-probs + CE loss accumulated in SMEM)
# ---------------------------------------------------------------------------
def _fused_train_kernel(feat_ref, we_ref, be_ref, wc_ref, bc_ref, lbl_ref,
                        logprobs_ref, loss_ref, *, num_classes, true_b):
    i = pl.program_id(0)

    @pl.when(i == 0)
    def _():
        loss_ref[0, 0] = jnp.float32(0.0)

    lp, lane = _compute_logprobs(feat_ref[...], we_ref[...], be_ref[...],
                                 wc_ref[...], bc_ref[...], num_classes)
    logprobs_ref[...] = lp

    tb = lp.shape[0]
    # CE: gather logprobs[b, label_b] with a lane-iota compare (no HBM one-hot).
    onehot = lane == lbl_ref[...]                                   # (TB, Np) bool
    per_ex = -jnp.sum(jnp.where(onehot, lp, 0.0), axis=-1, keepdims=True)  # (TB, 1)
    row = jax.lax.broadcasted_iota(jnp.int32, (tb, 1), 0) + i * tb
    per_ex = jnp.where(row < true_b, per_ex, 0.0)                   # mask batch padding
    loss_ref[0, 0] = loss_ref[0, 0] + jnp.sum(per_ex) / jnp.float32(true_b)


# ---------------------------------------------------------------------------
# Wrapper: pooling fold, padding, BlockSpecs, pallas_call
# ---------------------------------------------------------------------------
def custom_model_forward(x, label, we, be, wc, bc, patch=4):
    B, H, W, C = x.shape
    ph, pw = H // patch, W // patch
    K = patch * patch * C
    D = we.shape[1]

    # Linear stand-in backbone: mean over the (ph, pw) patch grid commutes with the
    # patch-embed matmul -> reduce first directly from NHWC (cheap XLA reduce, no
    # materialized 6-D transpose, no (B,P,K)/(B,P,D) intermediates).
    feat = (x.astype(jnp.float32)
            .reshape(B, ph, patch, pw, patch, C)
            .mean(axis=(1, 3))
            .reshape(B, K))

    # Zero-pad everything to lane/sublane-aligned tiles (exact no-ops numerically).
    Kp = _round_up(K, LANE)
    Dp = _round_up(D, LANE)
    Np = _round_up(NUM_CLASSES, LANE)
    if B > 64:
        TB = 128
        Bp = _round_up(B, TB)
    else:
        Bp = _round_up(B, SUBLANE)
        TB = Bp
    grid = (Bp // TB,)

    feat_p = jnp.zeros((Bp, Kp), jnp.float32).at[:B, :K].set(feat)
    we_p = jnp.zeros((Kp, Dp), jnp.float32).at[:K, :D].set(we.astype(jnp.float32))
    be_p = jnp.zeros((1, Dp), jnp.float32).at[:, :D].set(
        be.reshape(1, D).astype(jnp.float32))
    wc_p = jnp.zeros((Dp, Np), jnp.float32).at[:D, :NUM_CLASSES].set(
        wc.astype(jnp.float32))
    bc_p = jnp.zeros((1, Np), jnp.float32).at[:, :NUM_CLASSES].set(
        bc.reshape(1, NUM_CLASSES).astype(jnp.float32))

    flops = 2 * Bp * Kp * Dp + 2 * Bp * Dp * Np
    transcendentals = Bp * Dp + Bp * Np          # tanh + exp
    bytes_accessed = 4 * (Bp * Kp + Kp * Dp + Dp + Dp * Np + Np + Bp * Np + Bp + 1)
    cost = pl.CostEstimate(flops=flops, transcendentals=transcendentals,
                           bytes_accessed=bytes_accessed)

    feat_spec = pl.BlockSpec((TB, Kp), lambda i: (i, 0), memory_space=pltpu.VMEM)
    we_spec = pl.BlockSpec((Kp, Dp), lambda i: (0, 0), memory_space=pltpu.VMEM)
    be_spec = pl.BlockSpec((1, Dp), lambda i: (0, 0), memory_space=pltpu.VMEM)
    wc_spec = pl.BlockSpec((Dp, Np), lambda i: (0, 0), memory_space=pltpu.VMEM)
    bc_spec = pl.BlockSpec((1, Np), lambda i: (0, 0), memory_space=pltpu.VMEM)
    lp_spec = pl.BlockSpec((TB, Np), lambda i: (i, 0), memory_space=pltpu.VMEM)

    if label is None:
        logprobs_p = pl.pallas_call(
            functools.partial(_fused_infer_kernel, num_classes=NUM_CLASSES),
            grid=grid,
            in_specs=[feat_spec, we_spec, be_spec, wc_spec, bc_spec],
            out_specs=lp_spec,
            out_shape=jax.ShapeDtypeStruct((Bp, Np), jnp.float32),
            compiler_params=pltpu.CompilerParams(
                dimension_semantics=("parallel",)),
            cost_estimate=cost,
        )(feat_p, we_p, be_p, wc_p, bc_p)
        return logprobs_p[:B, :NUM_CLASSES], None

    labels_p = jnp.zeros((Bp, 1), jnp.int32).at[:B, 0].set(label.astype(jnp.int32))
    lbl_spec = pl.BlockSpec((TB, 1), lambda i: (i, 0), memory_space=pltpu.VMEM)

    logprobs_p, loss = pl.pallas_call(
        functools.partial(_fused_train_kernel, num_classes=NUM_CLASSES, true_b=B),
        grid=grid,
        in_specs=[feat_spec, we_spec, be_spec, wc_spec, bc_spec, lbl_spec],
        out_specs=(lp_spec, pl.BlockSpec(memory_space=pltpu.SMEM)),
        out_shape=(jax.ShapeDtypeStruct((Bp, Np), jnp.float32),
                   jax.ShapeDtypeStruct((1, 1), jnp.float32)),
        compiler_params=pltpu.CompilerParams(
            dimension_semantics=("arbitrary",)),   # loss accumulates across batch tiles
        cost_estimate=cost,
    )(feat_p, we_p, be_p, wc_p, bc_p, labels_p)
    return logprobs_p[:B, :NUM_CLASSES], loss[0, 0]


# ---------------------------------------------------------------------------
# Pure-JAX reference (original formulation: patch-embed then mean-pool)
# ---------------------------------------------------------------------------
def _ref_forward(x, label, we, be, wc, bc, patch=4):
    B, H, W, C = x.shape
    ph, pw = H // patch, W // patch
    patches = x.reshape(B, ph, patch, pw, patch, C).transpose(0, 1, 3, 2, 4, 5)
    patches = patches.reshape(B, ph * pw, patch * patch * C).astype(jnp.float32)
    emb = jnp.einsum("bpk,kd->bpd", patches, we) + be.reshape(1, 1, -1)
    pooled = jnp.mean(emb, axis=1)
    logits = jnp.tanh(pooled) @ wc + bc
    logprobs = jax.nn.log_softmax(logits, axis=-1)
    loss = None
    if label is not None:
        onehot = jax.nn.one_hot(label, NUM_CLASSES, dtype=jnp.float32)
        loss = -jnp.mean(jnp.sum(onehot * logprobs, axis=-1))
    return logprobs, loss


if __name__ == "__main__":
    key = jax.random.PRNGKey(0)
    k1, k2, k3, k4, k5 = jax.random.split(key, 5)

    B, H, W, C = 2, 16, 16, 3
    PATCH, D = 4, 32
    K = PATCH * PATCH * C

    x = jax.random.normal(k1, (B, H, W, C), jnp.float32)
    we = jax.random.normal(k2, (K, D), jnp.float32) * 0.05    # patch-embed weight
    be = jax.random.normal(k3, (1, D), jnp.float32) * 0.01    # patch-embed bias
    wc = jax.random.normal(k4, (D, NUM_CLASSES), jnp.float32) * 0.1   # clf weight
    bc = jax.random.normal(k5, (1, NUM_CLASSES), jnp.float32) * 0.01  # clf bias
    label = jnp.array([3, 17], dtype=jnp.int32)

    # with label -> (logprobs, loss)
    logprobs, loss = custom_model_forward(x, label, we, be, wc, bc, patch=PATCH)
    jax.block_until_ready((logprobs, loss))

    # without label -> (logprobs, None)
    logprobs_nl, loss_nl = custom_model_forward(x, None, we, be, wc, bc, patch=PATCH)
    jax.block_until_ready(logprobs_nl)
    assert loss_nl is None

    # correctness vs pure-JAX reference
    ref_lp, ref_loss = _ref_forward(x, label, we, be, wc, bc, patch=PATCH)
    assert jnp.allclose(logprobs, ref_lp, atol=1e-5, rtol=1e-5)
    assert jnp.allclose(loss, ref_loss, atol=1e-5, rtol=1e-5)
    assert jnp.allclose(logprobs_nl, ref_lp, atol=1e-5, rtol=1e-5)

    print("KERNEL_OK")
</pallas_src>

<mosaic_0001>
module attributes {stable_mosaic.version = 11 : i64} {
  func.func @_fused_train_kernel(%arg0: i32, %arg1: memref<8x128xf32, #tpu.memory_space<vmem>>, %arg2: memref<128x128xf32, #tpu.memory_space<vmem>>, %arg3: memref<1x128xf32, #tpu.memory_space<vmem>>, %arg4: memref<128x128xf32, #tpu.memory_space<vmem>>, %arg5: memref<1x128xf32, #tpu.memory_space<vmem>>, %arg6: memref<8x1xi32, #tpu.memory_space<vmem>>, %arg7: memref<8x128xf32, #tpu.memory_space<vmem>>, %arg8: memref<1x1xf32, #tpu.memory_space<smem>>) attributes {dimension_semantics = [#tpu.dimension_semantics<arbitrary>], iteration_bounds = array<i64: 1>, scalar_prefetch = 0 : i64, scratch_operands = 0 : i64, tpu.core_type = #tpu.core_type<tc>, window_params = [{transform_indices = @transform_0, window_bounds = array<i64: 8, 128>}, {pipeline_mode = #tpu.pipeline_mode<synchronous>, transform_indices = @transform_1, window_bounds = array<i64: 128, 128>}, {pipeline_mode = #tpu.pipeline_mode<synchronous>, transform_indices = @transform_2, window_bounds = array<i64: 1, 128>}, {pipeline_mode = #tpu.pipeline_mode<synchronous>, transform_indices = @transform_3, window_bounds = array<i64: 128, 128>}, {pipeline_mode = #tpu.pipeline_mode<synchronous>, transform_indices = @transform_4, window_bounds = array<i64: 1, 128>}, {transform_indices = @transform_5, window_bounds = array<i64: 8, 1>}, {transform_indices = @transform_6, window_bounds = array<i64: 8, 128>}, {transform_indices = @transform_7, window_bounds = array<i64: 1, 1>}]} {
    %c0_i32 = arith.constant 0 : i32
    %0 = arith.cmpi eq, %arg0, %c0_i32 : i32
    %1 = arith.extui %0 : i1 to i32
    %c0_i32_0 = arith.constant 0 : i32
    %2 = arith.cmpi ne, %1, %c0_i32_0 : i32
    scf.if %2 {
      %cst_28 = arith.constant 0.000000e+00 : f32
      %c0_29 = arith.constant 0 : index
      %c0_30 = arith.constant 0 : index
      %56 = memref.load %arg8[%c0_29, %c0_30] : memref<1x1xf32, #tpu.memory_space<smem>>
      memref.store %cst_28, %arg8[%c0_29, %c0_30] : memref<1x1xf32, #tpu.memory_space<smem>>
    } else {
    }
    %c0 = arith.constant 0 : index
    %c0_1 = arith.constant 0 : index
    %3 = vector.load %arg1[%c0, %c0_1] : memref<8x128xf32, #tpu.memory_space<vmem>>, vector<8x128xf32>
    %c0_2 = arith.constant 0 : index
    %c0_3 = arith.constant 0 : index
    %4 = vector.load %arg2[%c0_2, %c0_3] : memref<128x128xf32, #tpu.memory_space<vmem>>, vector<128x128xf32>
    %c0_4 = arith.constant 0 : index
    %c0_5 = arith.constant 0 : index
    %5 = vector.load %arg3[%c0_4, %c0_5] : memref<1x128xf32, #tpu.memory_space<vmem>>, vector<1x128xf32>
    %c0_6 = arith.constant 0 : index
    %c0_7 = arith.constant 0 : index
    %6 = vector.load %arg4[%c0_6, %c0_7] : memref<128x128xf32, #tpu.memory_space<vmem>>, vector<128x128xf32>
    %c0_8 = arith.constant 0 : index
    %c0_9 = arith.constant 0 : index
    %7 = vector.load %arg5[%c0_8, %c0_9] : memref<1x128xf32, #tpu.memory_space<vmem>>, vector<1x128xf32>
    %cst = arith.constant dense<0.000000e+00> : vector<8x128xf32>
    %8 = tpu.matmul %3, %4, %cst {dimension_numbers = #tpu.dot_dimension_numbers<[1], [0], [0], [1], [0, 0, 1, 1], [], []>} : vector<8x128xf32>, vector<128x128xf32>, vector<8x128xf32> -> vector<8x128xf32>
    %9 = vector.broadcast %5 : vector<1x128xf32> to vector<8x128xf32>
    %10 = arith.addf %8, %9 : vector<8x128xf32>
    %11 = math.tanh %10 : vector<8x128xf32>
    %cst_10 = arith.constant dense<0.000000e+00> : vector<8x128xf32>
    %12 = tpu.matmul %11, %6, %cst_10 {dimension_numbers = #tpu.dot_dimension_numbers<[1], [0], [0], [1], [0, 0, 1, 1], [], []>} : vector<8x128xf32>, vector<128x128xf32>, vector<8x128xf32> -> vector<8x128xf32>
    %13 = vector.broadcast %7 : vector<1x128xf32> to vector<8x128xf32>
    %14 = arith.addf %12, %13 : vector<8x128xf32>
    %15 = tpu.iota {dimensions = array<i32: 1>} : vector<8x128xi32>
    %c25_i32 = arith.constant 25 : i32
    %16 = vector.broadcast %c25_i32 : i32 to vector<8x128xi32>
    %17 = arith.cmpi slt, %15, %16 : vector<8x128xi32>
    %cst_11 = arith.constant 0xFF800000 : f32
    %18 = vector.broadcast %cst_11 : f32 to vector<8x128xf32>
    %19 = arith.select %17, %14, %18 : vector<8x128xi1>, vector<8x128xf32>
    %cst_12 = arith.constant dense<0xFF800000> : vector<8xf32>
    %20 = vector.multi_reduction <maximumf>, %19, %cst_12 [1] : vector<8x128xf32> to vector<8xf32>
    %21 = vector.shape_cast %20 : vector<8xf32> to vector<8x1xf32>
    %22 = vector.broadcast %21 : vector<8x1xf32> to vector<8x128xf32>
    %23 = arith.subf %19, %22 : vector<8x128xf32>
    %24 = math.exp %23 : vector<8x128xf32>
    %cst_13 = arith.constant dense<0.000000e+00> : vector<8xf32>
    %25 = vector.multi_reduction <add>, %24, %cst_13 [1] : vector<8x128xf32> to vector<8xf32>
    %26 = vector.shape_cast %25 : vector<8xf32> to vector<8x1xf32>
    %27 = math.log %26 : vector<8x1xf32>
    %28 = vector.broadcast %27 : vector<8x1xf32> to vector<8x128xf32>
    %29 = arith.subf %23, %28 : vector<8x128xf32>
    %c0_14 = arith.constant 0 : index
    %c0_15 = arith.constant 0 : index
    %30 = vector.load %arg7[%c0_14, %c0_15] : memref<8x128xf32, #tpu.memory_space<vmem>>, vector<8x128xf32>
    tpu.vector_store %arg7[%c0_14, %c0_15], %29 {strides = array<i32>} : memref<8x128xf32, #tpu.memory_space<vmem>>, vector<8x128xf32>,
    %c0_16 = arith.constant 0 : index
    %c0_17 = arith.constant 0 : index
    %31 = vector.load %arg6[%c0_16, %c0_17] : memref<8x1xi32, #tpu.memory_space<vmem>>, vector<8x1xi32>
    %32 = vector.broadcast %31 : vector<8x1xi32> to vector<8x128xi32>
    %33 = arith.cmpi eq, %15, %32 : vector<8x128xi32>
    %cst_18 = arith.constant 0.000000e+00 : f32
    %34 = vector.broadcast %cst_18 : f32 to vector<8x128xf32>
    %35 = arith.select %33, %29, %34 : vector<8x128xi1>, vector<8x128xf32>
    %cst_19 = arith.constant dense<0.000000e+00> : vector<8xf32>
    %36 = vector.multi_reduction <add>, %35, %cst_19 [1] : vector<8x128xf32> to vector<8xf32>
    %37 = vector.shape_cast %36 : vector<8xf32> to vector<8x1xf32>
    %cst_20 = arith.constant 0.000000e+00 : f32
    %38 = vector.broadcast %cst_20 : f32 to vector<8x1xf32>
    %39 = arith.subf %38, %37 : vector<8x1xf32>
    %40 = tpu.iota {dimensions = array<i32: 0>} : vector<8x1xi32>
    %c8_i32 = arith.constant 8 : i32
    %41 = arith.muli %arg0, %c8_i32 : i32
    %42 = vector.broadcast %41 : i32 to vector<8x1xi32>
    %43 = arith.addi %40, %42 : vector<8x1xi32>
    %c2_i32 = arith.constant 2 : i32
    %44 = vector.broadcast %c2_i32 : i32 to vector<8x1xi32>
    %45 = arith.cmpi slt, %43, %44 : vector<8x1xi32>
    %cst_21 = arith.constant 0.000000e+00 : f32
    %46 = vector.broadcast %cst_21 : f32 to vector<8x1xf32>
    %47 = arith.select %45, %39, %46 : vector<8x1xi1>, vector<8x1xf32>
    %c0_22 = arith.constant 0 : index
    %c0_23 = arith.constant 0 : index
    %48 = memref.load %arg8[%c0_22, %c0_23] : memref<1x1xf32, #tpu.memory_space<smem>>
    %49 = vector.shape_cast %47 : vector<8x1xf32> to vector<1x8x1xf32>
    %cst_24 = arith.constant dense<0.000000e+00> : vector<1xf32>
    %50 = vector.multi_reduction <add>, %49, %cst_24 [1, 2] : vector<1x8x1xf32> to vector<1xf32>
    %51 = vector.shape_cast %50 : vector<1xf32> to vector<1x1x1xf32>
    %52 = vector.extract %51[0, 0, 0] : f32 from vector<1x1x1xf32>
    %cst_25 = arith.constant 2.000000e+00 : f32
    %53 = arith.divf %52, %cst_25 : f32
    %54 = arith.addf %48, %53 : f32
    %c0_26 = arith.constant 0 : index
    %c0_27 = arith.constant 0 : index
    %55 = memref.load %arg8[%c0_26, %c0_27] : memref<1x1xf32, #tpu.memory_space<smem>>
    memref.store %54, %arg8[%c0_26, %c0_27] : memref<1x1xf32, #tpu.memory_space<smem>>
    return
  }
  func.func @transform_0(%arg0: i32) -> (i32, i32) {
    %c0_i32 = arith.constant 0 : i32
    %c0_i32_0 = arith.constant 0 : i32
    return %arg0, %c0_i32 : i32, i32
  }
  func.func @transform_1(%arg0: i32) -> (i32, i32) {
    %c0_i32 = arith.constant 0 : i32
    %c0_i32_0 = arith.constant 0 : i32
    %c0_i32_1 = arith.constant 0 : i32
    return %c0_i32, %c0_i32_0 : i32, i32
  }
  func.func @transform_2(%arg0: i32) -> (i32, i32) {
    %c0_i32 = arith.constant 0 : i32
    %c0_i32_0 = arith.constant 0 : i32
    %c0_i32_1 = arith.constant 0 : i32
    return %c0_i32, %c0_i32_0 : i32, i32
  }
  func.func @transform_3(%arg0: i32) -> (i32, i32) {
    %c0_i32 = arith.constant 0 : i32
    %c0_i32_0 = arith.constant 0 : i32
    %c0_i32_1 = arith.constant 0 : i32
    return %c0_i32, %c0_i32_0 : i32, i32
  }
  func.func @transform_4(%arg0: i32) -> (i32, i32) {
    %c0_i32 = arith.constant 0 : i32
    %c0_i32_0 = arith.constant 0 : i32
    %c0_i32_1 = arith.constant 0 : i32
    return %c0_i32, %c0_i32_0 : i32, i32
  }
  func.func @transform_5(%arg0: i32) -> (i32, i32) {
    %c0_i32 = arith.constant 0 : i32
    %c0_i32_0 = arith.constant 0 : i32
    return %arg0, %c0_i32 : i32, i32
  }
  func.func @transform_6(%arg0: i32) -> (i32, i32) {
    %c0_i32 = arith.constant 0 : i32
    %c0_i32_0 = arith.constant 0 : i32
    return %arg0, %c0_i32 : i32, i32
  }
  func.func @transform_7(%arg0: i32) -> (i32, i32) {
    %c0_i32 = arith.constant 0 : i32
    %c0_i32_0 = arith.constant 0 : i32
    %c0_i32_1 = arith.constant 0 : i32
    return %c0_i32, %c0_i32_0 : i32, i32
  }
}

</mosaic_0001>

<bundles_post_ra>
// kernel: tpu_custom_call.1
= control target key start
LH: loop header
LB: loop body
LE: loop exit
PB: predicated region body
PF: predicated region fallthrough
CT: control target
= control target key end

     0   :  { %13 = vsyncpa [#allocation3], 0  ;;  %s712_s0 = inlined_call_operand.vmem [shape: f32[8,128], index: 0, kind: input, shape index: {}]   ;;  %s713_s1 = inlined_call_operand.hbm [shape: f32[128,128], index: 1, kind: input, shape index: {}]   ;;  %s714_s2 = inlined_call_operand.vmem [shape: f32[1,128], index: 2, kind: input, shape index: {}]   ;;  %s715_s3 = inlined_call_operand.hbm [shape: f32[128,128], index: 3, kind: input, shape index: {}]   ;;  %s716_s4 = inlined_call_operand.vmem [shape: f32[1,128], index: 4, kind: input, shape index: {}]   ;;  %s717_s5 = inlined_call_operand.vmem [shape: s32[8,1], index: 5, kind: input, shape index: {}]   ;;  %s718_s6 = inlined_call_operand.hbm [shape: f32[8,128], index: 6, kind: output, shape index: {0}]   ;;  %s719_s7 = inlined_call_operand.hbm [shape: f32[1,1], index: 7, kind: output, shape index: {1}]  }
   0x1   :  { %14 = vsyncpa [#allocation7], 0 }
   0x2   :  { %15 = vsyncpa [#allocation4], 0 }
   0x3   :  { %16 = vsyncpa [#allocation5], 0  ;;  %s586_s24 = smov [#allocation2]   ;;  %s502_s28 = scalar_lea.hbm %s713_s1, 2048 }
   0x4   :  { %s24_s25 = sshll.u32 %s586_s24, 4  ;;  %p503_p0 = scmp.ne.s32.totalorder %s713_s1, %s502_s28  ;;  %s25_s25 = int_to_ptr.vmem [resolvable:$true] %s24_s25 }
   0x5   :  { %p506_p1 = scmp.lt.u32.totalorder %s502_s28, %s713_s1 }
   0x7   :  { %p508_p2 = pnand %p506_p1, %p503_p0 }
   0x9   :  { %511 = shalt.err (!%p508_p2)
}
   0xa   :  { %s512_s10 = scalar_lea.vmem %s25_s25, 2048  ;;  %p517_p4 = scmp.lt.s32.totalorder %s25_s25, %s25_s25 }
   0xb   :  { %p513_p3 = scmp.ne.s32.totalorder %s25_s25, %s512_s10  ;;  %p518_p5 = scmp.lt.s32.totalorder %s512_s10, %s512_s10 }
   0xd   :  { %p519_p6 = por %p518_p5, %p517_p4 }
   0xf   :  { %p520_p7 = pnand %p519_p6, %p513_p3 }
  0x11   :  { %523 = shalt.err (!%p520_p7)
}
  0x12   :  { %s587_s11 = smov 128   ;;  %s588_s12 = smov 8  }
  0x13   :  { %30 = dma.hbm_to_vmem [thread:$0]  %s713_s1, 2048, %s25_s25, [#allocation3], %s587_s11, %s587_s11, %s588_s12  }
  0x14   :  { %s589_s15 = smov [#allocation6]   ;;  %s524_s19 = scalar_lea.hbm %s715_s3, 2048 }
  0x15   :  { %s38_s16 = sshll.u32 %s589_s15, 4  ;;  %p525_p8 = scmp.ne.s32.totalorder %s715_s3, %s524_s19  ;;  %s39_s16 = int_to_ptr.vmem [resolvable:$true] %s38_s16 }
  0x16   :  { %p528_p9 = scmp.lt.u32.totalorder %s524_s19, %s715_s3 }
  0x18   :  { %p530_p10 = pnand %p528_p9, %p525_p8 }
  0x1a   :  { %533 = shalt.err (!%p530_p10)
}
  0x1b   :  { %s534_s24 = scalar_lea.vmem %s39_s16, 2048  ;;  %p539_p12 = scmp.lt.s32.totalorder %s39_s16, %s39_s16 }
  0x1c   :  { %p535_p11 = scmp.ne.s32.totalorder %s39_s16, %s534_s24  ;;  %p540_p13 = scmp.lt.s32.totalorder %s534_s24, %s534_s24 }
  0x1e   :  { %p541_p0 = por %p540_p13, %p539_p12 }
  0x20   :  { %p542_p1 = pnand %p541_p0, %p535_p11 }
  0x22   :  { %545 = shalt.err (!%p542_p1)
}
  0x23   :  { %44 = dma.hbm_to_vmem [thread:$0]  %s715_s3, 2048, %s39_s16, [#allocation7], %s587_s11, %s587_s11, %s588_s12  }
  0x24   :  { %578 = dma.done.wait [#allocation3], 2048  }
  0x25   :  { %579 = vsyncadd [#allocation3], 4294965248 }
  0x26   :  { %580 = dma.done.wait [#allocation7], 2048  }
  0x27   :  { %581 = vsyncadd [#allocation7], 4294965248  ;;  %v590_v0 = vmov 0.0|0.0   ;;  %vm591_vm0 = vmmov 0   ;;  %v592_v1 = vmov 0.0   ;;  %v62_v2 = vld [vmem:[#allocation2] sm:$0xff]  ;;  %v249_v56 = vlaneseq }
  0x28   :  { %433 = vmatprep.subr.bf16.mxu0 %v590_v0  ;;  %395 = vmatprep.mubr.msk.f32.mxu0 %vm591_vm0, %v592_v1  ;;  %v63_v3 = vld [vmem:[#allocation2 + $0x8] sm:$0xff]  ;;  %v64_v4 = vld [vmem:[#allocation2 + $0x10] sm:$0xff]  ;;  %v65_v6 = vld [vmem:[#allocation2 + $0x18] sm:$0xff]  ;;  %vm281_vm4 = vcmask 7168  }
  0x29   :  { %457 = vmatprep.subr.bf16.mxu1 %v590_v0  ;;  %430 = vmatprep.mubr.msk.f32.mxu1 %vm591_vm0, %v592_v1  ;;  %v434_v5 = vpack.c.bf16 %v63_v3, %v62_v2  ;;  %v437_v7 = vpack.c.bf16 %v65_v6, %v64_v4  ;;  %v66_v8 = vld [vmem:[#allocation2 + $0x20] sm:$0xff]  ;;  %v67_v9 = vld [vmem:[#allocation2 + $0x28] sm:$0xff]  ;;  %v81_v12 = vld [vmem:[#allocation6 + $0x10] sm:$0xff]  ;;  %v250_v57 = vand.u32 127, %v249_v56 }
  0x2a   :  { %v79_v10 = vld [vmem:[#allocation6] sm:$0xff]  ;;  %v80_v11 = vld [vmem:[#allocation6 + $0x8] sm:$0xff]  ;;  %v82_v13 = vld [vmem:[#allocation6 + $0x18] sm:$0xff]  ;;  %v440_v14 = vpack.c.bf16 %v67_v9, %v66_v8 }
  0x2b   :  { %435 = vmatpush3.bf16.msra.mxu0 %v434_v5  ;;  %v458_v15 = vpack.c.bf16 %v80_v11, %v79_v10  ;;  %v68_v16 = vld [vmem:[#allocation2 + $0x30] sm:$0xff]  ;;  %v69_v17 = vld [vmem:[#allocation2 + $0x38] sm:$0xff]  ;;  %v461_v18 = vpack.c.bf16 %v82_v13, %v81_v12  ;;  %v83_v19 = vld [vmem:[#allocation6 + $0x20] sm:$0xff]  ;;  %vm251_vm1 = vcmp.lt.s32.totalorder %v250_v57, 25  ;;  %v274_v11 = vshrl.u32 %v249_v56, 7 }
  0x2c   :  { %436 = vmatprep.subr.bf16.mxu0 %v590_v0  ;;  %v84_v20 = vld [vmem:[#allocation6 + $0x28] sm:$0xff]  ;;  %v443_v21 = vpack.c.bf16 %v69_v17, %v68_v16  ;;  %v70_v22 = vld [vmem:[#allocation2 + $0x40] sm:$0xff]  ;;  %v85_v25 = vld [vmem:[#allocation6 + $0x30] sm:$0xff] }
  0x2d   :  { %459 = vmatpush3.bf16.msra.mxu1 %v458_v15  ;;  %v71_v23 = vld [vmem:[#allocation2 + $0x48] sm:$0xff]  ;;  %v464_v24 = vpack.c.bf16 %v84_v20, %v83_v19  ;;  %v86_v26 = vld [vmem:[#allocation6 + $0x38] sm:$0xff]  ;;  %v72_v28 = vld [vmem:[#allocation2 + $0x50] sm:$0xff]  ;;  %vm278_vm3 = vcmp.lt.s32.totalorder %v274_v11, 2 }
  0x2e   :  { %460 = vmatprep.subr.bf16.mxu1 %v590_v0  ;;  %v446_v27 = vpack.c.bf16 %v71_v23, %v70_v22  ;;  %v73_v29 = vld [vmem:[#allocation2 + $0x58] sm:$0xff]  ;;  %v467_v30 = vpack.c.bf16 %v86_v26, %v85_v25  ;;  %v87_v31 = vld [vmem:[#allocation6 + $0x40] sm:$0xff]  ;;  %v88_v32 = vld [vmem:[#allocation6 + $0x48] sm:$0xff] }
  0x2f   :  { %438 = vmatpush3.bf16.msra.mxu0 %v437_v7  ;;  %v449_v33 = vpack.c.bf16 %v73_v29, %v72_v28  ;;  %v74_v34 = vld [vmem:[#allocation2 + $0x60] sm:$0xff]  ;;  %v75_v35 = vld [vmem:[#allocation2 + $0x68] sm:$0xff]  ;;  %v470_v36 = vpack.c.bf16 %v88_v32, %v87_v31  ;;  %v76_v38 = vld [vmem:[#allocation2 + $0x70] sm:$0xff] }
  0x30   :  { %439 = vmatprep.subr.bf16.mxu0 %v590_v0  ;;  %v452_v37 = vpack.c.bf16 %v75_v35, %v74_v34  ;;  %v77_v39 = vld [vmem:[#allocation2 + $0x78] sm:$0xff]  ;;  %v61_v41 = vld [vmem:[%s712_s0] sm:$0xff]  ;;  %v89_v42 = vld [vmem:[#allocation6 + $0x50] sm:$0xff] }
  0x31   :  { %462 = vmatpush3.bf16.msra.mxu1 %v461_v18  ;;  %v455_v40 = vpack.c.bf16 %v77_v39, %v76_v38  ;;  %v90_v43 = vld [vmem:[#allocation6 + $0x58] sm:$0xff]  ;;  %v91_v45 = vld [vmem:[#allocation6 + $0x60] sm:$0xff]  ;;  %v92_v46 = vld [vmem:[#allocation6 + $0x68] sm:$0xff] }
  0x32   :  { %463 = vmatprep.subr.bf16.mxu1 %v590_v0  ;;  %v473_v44 = vpack.c.bf16 %v90_v43, %v89_v42  ;;  %v476_v47 = vpack.c.bf16 %v92_v46, %v91_v45  ;;  %v93_v48 = vld [vmem:[#allocation6 + $0x70] sm:$0xff]  ;;  %v94_v49 = vld [vmem:[#allocation6 + $0x78] sm:$0xff]  ;;  %v327_v51 = vld [vmem:[%s714_s2] ss:$0 sm:$0xff] }
  0x33   :  { %441 = vmatpush3.bf16.msra.mxu0 %v440_v14  ;;  %v479_v50 = vpack.c.bf16 %v94_v49, %v93_v48  ;;  %v328_v58 = vld [vmem:[%s716_s4] ss:$0 sm:$0xff]  ;;  %s594_s4 = smov [#allocation8]  }
  0x34   :  { %442 = vmatprep.subr.bf16.mxu0 %v590_v0  ;;  %v264_v63 = vld [vmem:[%s717_s5] sm:$0xff]  ;;  %s304_s5 = sshll.u32 %s594_s4, 4  ;;  %s305_s5 = int_to_ptr.vmem [resolvable:$true] %s304_s5 }
  0x35   :  { %465 = vmatpush3.bf16.msra.mxu1 %v464_v24  ;;  %s546_s8 = scalar_lea.vmem %s305_s5, 128  ;;  %p551_p3 = scmp.lt.s32.totalorder %s305_s5, %s305_s5 }
  0x36   :  { %466 = vmatprep.subr.bf16.mxu1 %v590_v0  ;;  %p547_p2 = scmp.ne.s32.totalorder %s305_s5, %s546_s8  ;;  %p552_p4 = scmp.lt.s32.totalorder %s546_s8, %s546_s8 }
  0x37   :  { %444 = vmatpush3.bf16.msra.mxu0 %v443_v21 }
  0x38   :  { %445 = vmatprep.subr.bf16.mxu0 %v590_v0  ;;  %p553_p5 = por %p552_p4, %p551_p3 }
  0x39   :  { %468 = vmatpush3.bf16.msra.mxu1 %v467_v30 }
  0x3a   :  { %469 = vmatprep.subr.bf16.mxu1 %v590_v0  ;;  %p554_p6 = pnand %p553_p5, %p547_p2 }
  0x3b   :  { %447 = vmatpush3.bf16.msra.mxu0 %v446_v27 }
  0x3c   :  { %448 = vmatprep.subr.bf16.mxu0 %v590_v0 }
  0x3d   :  { %471 = vmatpush3.bf16.msra.mxu1 %v470_v36 }
  0x3e   :  { %472 = vmatprep.subr.bf16.mxu1 %v590_v0 }
  0x3f   :  { %450 = vmatpush3.bf16.msra.mxu0 %v449_v33 }
  0x40   :  { %451 = vmatprep.subr.bf16.mxu0 %v590_v0 }
  0x41   :  { %474 = vmatpush3.bf16.msra.mxu1 %v473_v44 }
  0x42   :  { %475 = vmatprep.subr.bf16.mxu1 %v590_v0 }
  0x43   :  { %453 = vmatpush3.bf16.msra.mxu0 %v452_v37 }
  0x44   :  { %454 = vmatprep.subr.bf16.mxu0 %v590_v0 }
  0x45   :  { %477 = vmatpush3.bf16.msra.mxu1 %v476_v47 }
  0x46   :  { %478 = vmatprep.subr.bf16.mxu1 %v590_v0  ;;  %v593_v0 = vmov 0  }
  0x47   :  { %456 = vmatpush3.bf16.msra.mxu0 %v455_v40  ;;  %494 = vset.pattern.permute.xlu1 %v593_v0 }
  0x48   :  { %495 = vset.pattern.permute.xlu0 %v593_v0  ;;  %266 = vperm.xlu1 %494, %v264_v63  }
  0x49   :  { %480 = vmatpush3.bf16.msra.mxu1 %v479_v50 }
  0x4a   :  { %396 = vmatmul.mubr.f32.vlgmr.msra.gmra.mrb[0].mxu0 %v61_v41 }
  0xc7   :  { %v267_v6 = vpop.permute.xlu1 %266 }
  0xc8   :  { %vm268_vm2 = vcmp.eq.s32.totalorder %v250_v57, %v267_v6 }
 0x11d   :  { %v168_v52 = vpop.f32.mrb[0].mxu0 }
 0x11e   :  { %v169_v53 = vadd.f32 %v327_v51, %v168_v52  ;;  %v397_v54 = vpop.f32.mrb[1].mxu0 }
 0x120   :  { %496 = vtanh.f32 %v169_v53 }
 0x12a   :  { %v497_v55 = vpop.eup %496 }
 0x12b   :  { %431 = vmatmul.mubr.f32.vlgmr.msra.gmra.mrb[0].mxu1 %v497_v55 }
 0x1fe   :  { %v245_v59 = vpop.f32.mrb[0].mxu1 }
 0x1ff   :  { %v246_v60 = vadd.f32 %v328_v58, %v245_v59  ;;  %v432_v61 = vpop.f32.mrb[1].mxu1 }
 0x201   :  { %v252_v62 = vsel %vm251_vm1, %v246_v60, -inf }
 0x202   :  { %253 = vmax.xlane.f32.xlu0 %v252_v62 }
 0x28f   :  { %v254_v1 = vpop.xlane.xlu0 %253 }
 0x290   :  { %v255_v2 = vsub.f32 %v252_v62, %v254_v1 }
 0x292   :  { %v256_v3 = vmul.f32 1.442695, %v255_v2 }
 0x294   :  { %498 = vpow2.f32 %v256_v3 }
 0x29e   :  { %v499_v4 = vpop.eup %498 }
 0x29f   :  { %258 = vadd.xlane.f32.xlu0 %v499_v4 }
 0x32c   :  { %v259_v5 = vpop.xlane.xlu0 %258 }
 0x32d   :  { %500 = vlog2.f32 %v259_v5 }
 0x337   :  { %v501_v7 = vpop.eup %500 }
 0x338   :  { %v261_v8 = vmul.f32 0.6931472, %v501_v7 }
 0x33a   :  { %v262_v9 = vsub.f32 %v255_v2, %v261_v8 }
 0x33c   :  { %v269_v10 = vsel %vm268_vm2, %v262_v9, 0.0  ;;  %263 = vst [vmem:[#allocation8] sm:$0xff] %v262_v9 }
 0x33d   :  { %270 = vadd.xlane.f32.xlu1 %v269_v10 }
 0x3ca   :  { %v271_v12 = vpop.xlane.xlu1 %270 }
 0x3cb   :  { %v272_v13 = vsub.f32 0.0, %v271_v12 }
 0x3cd   :  { %v279_v14 = vsel %vm278_vm3, %v272_v13, 0.0 }
 0x3ce   :  { %v282_v15 = vsel %vm281_vm4, %v279_v14, 0.0 }
 0x3cf   :  { %283 = vadd.xlane.f32.xlu0 %v282_v15 }
 0x3d0   :  { %557 = shalt.err (!%p554_p6)
}
 0x3d1   :  { %s558_s11 = scalar_lea.hbm %s718_s6, 128 }
 0x3d2   :  { %p559_p7 = scmp.ne.s32.totalorder %s718_s6, %s558_s11  ;;  %p562_p8 = scmp.lt.u32.totalorder %s558_s11, %s718_s6 }
 0x3d4   :  { %p564_p9 = pnand %p562_p8, %p559_p7 }
 0x3d6   :  { %567 = shalt.err (!%p564_p9)
}
 0x3d7   :  { %307 = dma.vmem_to_hbm [thread:$0]  %s305_s5, 128, %s718_s6, [#allocation4]  }
 0x3d8   :  { %s568_s22 = scalar_lea.hbm %s719_s7, 16 }
 0x3d9   :  { %p569_p10 = scmp.ne.s32.totalorder %s719_s7, %s568_s22  ;;  %p572_p11 = scmp.lt.u32.totalorder %s568_s22, %s719_s7 }
 0x3db   :  { %p574_p12 = pnand %p572_p11, %p569_p10 }
 0x45c   :  { %v284_v16 = vpop.xlane.xlu0 %283 }
 0x45d   :  { %v285_v17 = vrot.slane %v284_v16, 4 }
 0x45f   :  { %v286_v18 = vadd.f32 %v285_v17, %v284_v16 }
 0x461   :  { %v287_v19 = vrot.slane %v286_v18, 2 }
 0x463   :  { %v288_v20 = vadd.f32 %v287_v19, %v286_v18 }
 0x465   :  { %v289_v21 = vrot.slane %v288_v20, 1 }
 0x467   :  { %v290_v22 = vadd.f32 %v289_v21, %v288_v20 }
 0x469   :  { %481 = vpush %v290_v22 }
 0x49a   :  { %s482_s18 = spop %481 }
 0x49b   :  { %s294_s19 = smul.f32 0.5, %s482_s18 }
 0x49d   :  { %297 = sst [smem:[#allocation9]] %s294_s19 }
 0x49e   :  { %577 = shalt.err (!%p574_p12)
}
 0x49f   :  { %s595_s25 = smov [#allocation9]  }
 0x4a0   :  { %315 = dma.smem_to_hbm %s595_s25, 16, %s719_s7, [#allocation5]  }
 0x4a1   :  { %582 = dma.done.wait [#allocation4], 128  }
 0x4a2   :  { %583 = vsyncadd [#allocation4], 4294967168 }
 0x4a3   :  { %584 = dma.done.wait [#allocation5], 16  }
 0x4a4   :  { %585 = vsyncadd [#allocation5], 4294967280 }
 0x4a5   :  { %322 = sfence }
 0x4a6   :  { %323 = vsyncpa [#allocation3], 1 }
 0x4a7   :  { %324 = vsyncpa [#allocation7], 1 }
 0x4a8   :  { %325 = vsyncpa [#allocation4], 1 }
 0x4a9   :  { %326 = vsyncpa [#allocation5], 1 }

</bundles_post_ra>
